<compile_context>
chip_gen: v5e
topology: v5e:2x2
jax: 0.10.0
libtpu: 0.0.40
codegen_flags: <defaults>
</compile_context>

<pallas_src>
import jax
import jax.numpy as jnp
from jax.experimental import pallas as pl
from jax.experimental.pallas import tpu as pltpu

# ---------------- configuration (small, consistent with the module) ---------
B, Q, S = 2, 4, 8          # batch, num_quantizers, seq_len
D = 32                     # backbone.embed_dim
H = 64                     # stand-in backbone MLP hidden
C = 128                    # codebook_size (lane-exact)
VOCAB = C + 1              # + masked token id (== codebook_size)
QC = Q * C                 # fused heads output width
N = B * S                  # flattened rows

MXU_DTYPE = jnp.bfloat16   # MXU operand dtype (native on v6e/v7x; fine on v5e)


def _gelu(x):
    # tanh-approx GELU (used identically in kernel and reference), kept in f32
    return 0.5 * x * (1.0 + jnp.tanh(0.7978845608028654 * (x + 0.044715 * x * x * x)))


# ------------------------- fused Pallas kernel -------------------------------
def fused_lm_kernel(tok_ref, emb_ref, embm_ref, w1_ref, b1_ref,
                    w2h_ref, b2h_ref, out_ref):
    """One batch element per grid step: per-quantizer one-hot embedding sum
    -> stand-in backbone MLP -> fused quantizer heads -> (1, Q, S, C) logits.

    tok_ref  : (S, Q) int32 token ids for this batch element
    emb_ref  : (Q, C, D) bf16 per-quantizer embedding tables (ids < C)
    embm_ref : (Q, D) f32 masked-token (id == C) embedding rows
    w1_ref   : (D, H) bf16, b1_ref: (1, H) f32
    w2h_ref  : (H, Q*C) bf16 fused (w2 @ heads) weight, b2h_ref: (1, Q*C) f32
    out_ref  : (1, Q, S, C) f32 logits block
    """
    tok = tok_ref[...]                                             # (S, Q) int32
    lane = jax.lax.broadcasted_iota(jnp.int32, (S, C), 1)          # (S, C)

    # --- chunked per-quantizer embedding sum (K = C per MXU step) ------------
    x = jnp.zeros((S, D), jnp.float32)
    for q in range(Q):                                             # Q = 4, unrolled
        tq = tok[:, q:q + 1]                                       # (S, 1)
        oh = (lane == tq).astype(jnp.float32).astype(MXU_DTYPE)    # (S, C) one-hot
        x = x + jnp.dot(oh, emb_ref[q], preferred_element_type=jnp.float32)
        # masked token id (== C) lies outside the 128-wide one-hot: add its row
        x = x + (tq == C).astype(jnp.float32) * embm_ref[q:q + 1, :]

    # --- stand-in backbone: GELU MLP (2nd linear fused into the heads) -------
    h = _gelu(jnp.dot(x.astype(MXU_DTYPE), w1_ref[...],
                      preferred_element_type=jnp.float32) + b1_ref[...])

    # --- all quantizer heads (+ fused backbone-final linear) in one matmul ---
    full = jnp.dot(h.astype(MXU_DTYPE), w2h_ref[...],
                   preferred_element_type=jnp.float32) + b2h_ref[...]   # (S, Q*C)

    # emit directly in (B, Q, S, C) layout with (8, 128)-aligned tile stores
    for q in range(Q):
        out_ref[0, q, :, :] = full[:, q * C:(q + 1) * C]           # (S, C) = (8, 128)


# ------------------------- wrapper -------------------------------------------
def audio_lm_forward(sequence, params):
    emb = params["emb"]                                   # (Q, VOCAB, D) f32
    emb_main = emb[:, :C, :].astype(MXU_DTYPE)            # (Q, C, D) regular rows
    emb_mask = emb[:, C, :]                               # (Q, D) masked-token rows
    w1 = params["w1"].astype(MXU_DTYPE)                   # (D, H)
    b1 = params["b1"]                                     # (1, H) f32
    # backbone-final linear fused into the quantizer heads (host-side, f32)
    w2h = (params["w2"] @ params["whc"]).astype(MXU_DTYPE)        # (H, Q*C)
    b2h = params["b2"] @ params["whc"] + params["bhc"]            # (1, Q*C) f32

    # glue: (B, Q, S) tokens -> (N, Q) rows (batch-major)
    tok = jnp.transpose(sequence, (0, 2, 1)).reshape(N, Q).astype(jnp.int32)

    return pl.pallas_call(
        fused_lm_kernel,
        out_shape=jax.ShapeDtypeStruct((B, Q, S, C), jnp.float32),
        grid=(B,),
        in_specs=[
            pl.BlockSpec((S, Q), lambda b: (b, 0)),       # per-batch token tile
            pl.BlockSpec((Q, C, D), lambda b: (0, 0, 0)),  # weights stay resident
            pl.BlockSpec((Q, D), lambda b: (0, 0)),
            pl.BlockSpec((D, H), lambda b: (0, 0)),
            pl.BlockSpec((1, H), lambda b: (0, 0)),
            pl.BlockSpec((H, QC), lambda b: (0, 0)),
            pl.BlockSpec((1, QC), lambda b: (0, 0)),
        ],
        out_specs=pl.BlockSpec((1, Q, S, C), lambda b: (b, 0, 0, 0)),
        compiler_params=pltpu.CompilerParams(
            dimension_semantics=("parallel",)),
    )(tok, emb_main, emb_mask, w1, b1, w2h, b2h)


# ------------------------- pure-JAX f32 reference ----------------------------
def reference_forward(sequence, params):
    emb = params["emb"]                                              # (Q, VOCAB, D)
    x = jnp.zeros((B, S, D), jnp.float32)
    for q in range(Q):
        x = x + jnp.take(emb[q], sequence[:, q], axis=0)             # (B, S, D)
    h = _gelu(x @ params["w1"] + params["b1"][0])
    y = h @ params["w2"] + params["b2"][0]
    logits = jnp.stack(
        [y @ params["whc"][:, q * C:(q + 1) * C] + params["bhc"][0, q * C:(q + 1) * C]
         for q in range(Q)], axis=1)
    return logits                                                    # (B, Q, S, C)


# ------------------------- parameter init (deterministic) --------------------
def init_params(key):
    ks = jax.random.split(key, 7)
    emb = 0.02 * jax.random.normal(ks[0], (Q, VOCAB, D), jnp.float32)
    w1 = jax.random.normal(ks[1], (D, H), jnp.float32) / jnp.sqrt(D)
    b1 = 0.01 * jax.random.normal(ks[2], (1, H), jnp.float32)
    w2 = jax.random.normal(ks[3], (H, D), jnp.float32) / jnp.sqrt(H)
    b2 = 0.01 * jax.random.normal(ks[4], (1, D), jnp.float32)
    # per-quantizer heads stored pre-fused: whc[:, q*C:(q+1)*C] == head_q weight
    whc = jax.random.normal(ks[5], (D, QC), jnp.float32) / jnp.sqrt(D)
    bhc = 0.01 * jax.random.normal(ks[6], (1, QC), jnp.float32)
    return {"emb": emb, "w1": w1, "b1": b1, "w2": w2, "b2": b2,
            "whc": whc, "bhc": bhc}


if __name__ == "__main__":
    key = jax.random.PRNGKey(0)
    pkey, skey = jax.random.split(key)
    params = init_params(pkey)
    # tokens in [0, codebook_size] inclusive (masked_token_id == codebook_size)
    sequence = jax.random.randint(skey, (B, Q, S), 0, VOCAB, dtype=jnp.int32)

    fwd = jax.jit(audio_lm_forward)
    logits = fwd(sequence, params)
    logits = jax.block_until_ready(logits)

    ref = reference_forward(sequence, params)
    assert logits.shape == (B, Q, S, C), logits.shape
    # bf16 MXU operands + w2->heads fusion: compare against the f32 reference
    # at a correspondingly looser tolerance.
    max_err = float(jnp.max(jnp.abs(logits - ref)))
    assert jnp.allclose(logits, ref, atol=1e-2, rtol=1e-2), max_err

    print("KERNEL_OK")
</pallas_src>

<mosaic_0001>
module attributes {stable_mosaic.version = 11 : i64} {
  func.func @fused_lm_kernel(%arg0: i32, %arg1: memref<8x4xi32, #tpu.memory_space<vmem>>, %arg2: memref<4x128x32xbf16, #tpu.memory_space<vmem>>, %arg3: memref<4x32xf32, #tpu.memory_space<vmem>>, %arg4: memref<32x64xbf16, #tpu.memory_space<vmem>>, %arg5: memref<1x64xf32, #tpu.memory_space<vmem>>, %arg6: memref<64x512xbf16, #tpu.memory_space<vmem>>, %arg7: memref<1x512xf32, #tpu.memory_space<vmem>>, %arg8: memref<1x4x8x128xf32, #tpu.memory_space<vmem>>) attributes {dimension_semantics = [#tpu.dimension_semantics<parallel>], iteration_bounds = array<i64: 2>, scalar_prefetch = 0 : i64, scratch_operands = 0 : i64, tpu.core_type = #tpu.core_type<tc>, window_params = [{transform_indices = @transform_0, window_bounds = array<i64: 8, 4>}, {pipeline_mode = #tpu.pipeline_mode<synchronous>, transform_indices = @transform_1, window_bounds = array<i64: 4, 128, 32>}, {pipeline_mode = #tpu.pipeline_mode<synchronous>, transform_indices = @transform_2, window_bounds = array<i64: 4, 32>}, {pipeline_mode = #tpu.pipeline_mode<synchronous>, transform_indices = @transform_3, window_bounds = array<i64: 32, 64>}, {pipeline_mode = #tpu.pipeline_mode<synchronous>, transform_indices = @transform_4, window_bounds = array<i64: 1, 64>}, {pipeline_mode = #tpu.pipeline_mode<synchronous>, transform_indices = @transform_5, window_bounds = array<i64: 64, 512>}, {pipeline_mode = #tpu.pipeline_mode<synchronous>, transform_indices = @transform_6, window_bounds = array<i64: 1, 512>}, {transform_indices = @transform_7, window_bounds = array<i64: 1, 4, 8, 128>}]} {
    %c0 = arith.constant 0 : index
    %c0_0 = arith.constant 0 : index
    %0 = vector.load %arg1[%c0, %c0_0] : memref<8x4xi32, #tpu.memory_space<vmem>>, vector<8x4xi32>
    %1 = tpu.iota {dimensions = array<i32: 1>} : vector<8x128xi32>
    %cst = arith.constant 0.000000e+00 : f32
    %2 = vector.broadcast %cst : f32 to vector<8x32xf32>
    %3 = vector.extract_strided_slice %0 {offsets = [0, 0], sizes = [8, 1], strides = [1, 1]} : vector<8x4xi32> to vector<8x1xi32>
    %4 = vector.broadcast %3 : vector<8x1xi32> to vector<8x128xi32>
    %5 = arith.cmpi eq, %1, %4 : vector<8x128xi32>
    %6 = arith.extui %5 : vector<8x128xi1> to vector<8x128xi32>
    %7 = arith.sitofp %6 : vector<8x128xi32> to vector<8x128xf32>
    %8 = arith.truncf %7 : vector<8x128xf32> to vector<8x128xbf16>
    %c0_1 = arith.constant 0 : index
    %c0_2 = arith.constant 0 : index
    %c0_3 = arith.constant 0 : index
    %9 = vector.load %arg2[%c0_1, %c0_2, %c0_3] : memref<4x128x32xbf16, #tpu.memory_space<vmem>>, vector<1x128x32xbf16>
    %10 = vector.shape_cast %9 : vector<1x128x32xbf16> to vector<128x32xbf16>
    %cst_4 = arith.constant dense<0.000000e+00> : vector<8x32xf32>
    %11 = tpu.matmul %8, %10, %cst_4 {dimension_numbers = #tpu.dot_dimension_numbers<[1], [0], [0], [1], [0, 0, 1, 1], [], []>} : vector<8x128xbf16>, vector<128x32xbf16>, vector<8x32xf32> -> vector<8x32xf32>
    %12 = arith.addf %2, %11 : vector<8x32xf32>
    %c128_i32 = arith.constant 128 : i32
    %13 = vector.broadcast %c128_i32 : i32 to vector<8x1xi32>
    %14 = arith.cmpi eq, %3, %13 : vector<8x1xi32>
    %15 = arith.extui %14 : vector<8x1xi1> to vector<8x1xi32>
    %16 = arith.sitofp %15 : vector<8x1xi32> to vector<8x1xf32>
    %c0_5 = arith.constant 0 : index
    %c0_6 = arith.constant 0 : index
    %17 = vector.load %arg3[%c0_5, %c0_6] : memref<4x32xf32, #tpu.memory_space<vmem>>, vector<1x32xf32>
    %18 = vector.broadcast %16 : vector<8x1xf32> to vector<8x32xf32>
    %19 = vector.broadcast %17 : vector<1x32xf32> to vector<8x32xf32>
    %20 = arith.mulf %18, %19 : vector<8x32xf32>
    %21 = arith.addf %12, %20 : vector<8x32xf32>
    %22 = vector.extract_strided_slice %0 {offsets = [0, 1], sizes = [8, 1], strides = [1, 1]} : vector<8x4xi32> to vector<8x1xi32>
    %23 = vector.broadcast %22 : vector<8x1xi32> to vector<8x128xi32>
    %24 = arith.cmpi eq, %1, %23 : vector<8x128xi32>
    %25 = arith.extui %24 : vector<8x128xi1> to vector<8x128xi32>
    %26 = arith.sitofp %25 : vector<8x128xi32> to vector<8x128xf32>
    %27 = arith.truncf %26 : vector<8x128xf32> to vector<8x128xbf16>
    %c1 = arith.constant 1 : index
    %c0_7 = arith.constant 0 : index
    %c0_8 = arith.constant 0 : index
    %28 = vector.load %arg2[%c1, %c0_7, %c0_8] : memref<4x128x32xbf16, #tpu.memory_space<vmem>>, vector<1x128x32xbf16>
    %29 = vector.shape_cast %28 : vector<1x128x32xbf16> to vector<128x32xbf16>
    %cst_9 = arith.constant dense<0.000000e+00> : vector<8x32xf32>
    %30 = tpu.matmul %27, %29, %cst_9 {dimension_numbers = #tpu.dot_dimension_numbers<[1], [0], [0], [1], [0, 0, 1, 1], [], []>} : vector<8x128xbf16>, vector<128x32xbf16>, vector<8x32xf32> -> vector<8x32xf32>
    %31 = arith.addf %21, %30 : vector<8x32xf32>
    %c128_i32_10 = arith.constant 128 : i32
    %32 = vector.broadcast %c128_i32_10 : i32 to vector<8x1xi32>
    %33 = arith.cmpi eq, %22, %32 : vector<8x1xi32>
    %34 = arith.extui %33 : vector<8x1xi1> to vector<8x1xi32>
    %35 = arith.sitofp %34 : vector<8x1xi32> to vector<8x1xf32>
    %c1_11 = arith.constant 1 : index
    %c0_12 = arith.constant 0 : index
    %36 = vector.load %arg3[%c1_11, %c0_12] : memref<4x32xf32, #tpu.memory_space<vmem>>, vector<1x32xf32>
    %37 = vector.broadcast %35 : vector<8x1xf32> to vector<8x32xf32>
    %38 = vector.broadcast %36 : vector<1x32xf32> to vector<8x32xf32>
    %39 = arith.mulf %37, %38 : vector<8x32xf32>
    %40 = arith.addf %31, %39 : vector<8x32xf32>
    %41 = vector.extract_strided_slice %0 {offsets = [0, 2], sizes = [8, 1], strides = [1, 1]} : vector<8x4xi32> to vector<8x1xi32>
    %42 = vector.broadcast %41 : vector<8x1xi32> to vector<8x128xi32>
    %43 = arith.cmpi eq, %1, %42 : vector<8x128xi32>
    %44 = arith.extui %43 : vector<8x128xi1> to vector<8x128xi32>
    %45 = arith.sitofp %44 : vector<8x128xi32> to vector<8x128xf32>
    %46 = arith.truncf %45 : vector<8x128xf32> to vector<8x128xbf16>
    %c2 = arith.constant 2 : index
    %c0_13 = arith.constant 0 : index
    %c0_14 = arith.constant 0 : index
    %47 = vector.load %arg2[%c2, %c0_13, %c0_14] : memref<4x128x32xbf16, #tpu.memory_space<vmem>>, vector<1x128x32xbf16>
    %48 = vector.shape_cast %47 : vector<1x128x32xbf16> to vector<128x32xbf16>
    %cst_15 = arith.constant dense<0.000000e+00> : vector<8x32xf32>
    %49 = tpu.matmul %46, %48, %cst_15 {dimension_numbers = #tpu.dot_dimension_numbers<[1], [0], [0], [1], [0, 0, 1, 1], [], []>} : vector<8x128xbf16>, vector<128x32xbf16>, vector<8x32xf32> -> vector<8x32xf32>
    %50 = arith.addf %40, %49 : vector<8x32xf32>
    %c128_i32_16 = arith.constant 128 : i32
    %51 = vector.broadcast %c128_i32_16 : i32 to vector<8x1xi32>
    %52 = arith.cmpi eq, %41, %51 : vector<8x1xi32>
    %53 = arith.extui %52 : vector<8x1xi1> to vector<8x1xi32>
    %54 = arith.sitofp %53 : vector<8x1xi32> to vector<8x1xf32>
    %c2_17 = arith.constant 2 : index
    %c0_18 = arith.constant 0 : index
    %55 = vector.load %arg3[%c2_17, %c0_18] : memref<4x32xf32, #tpu.memory_space<vmem>>, vector<1x32xf32>
    %56 = vector.broadcast %54 : vector<8x1xf32> to vector<8x32xf32>
    %57 = vector.broadcast %55 : vector<1x32xf32> to vector<8x32xf32>
    %58 = arith.mulf %56, %57 : vector<8x32xf32>
    %59 = arith.addf %50, %58 : vector<8x32xf32>
    %60 = vector.extract_strided_slice %0 {offsets = [0, 3], sizes = [8, 1], strides = [1, 1]} : vector<8x4xi32> to vector<8x1xi32>
    %61 = vector.broadcast %60 : vector<8x1xi32> to vector<8x128xi32>
    %62 = arith.cmpi eq, %1, %61 : vector<8x128xi32>
    %63 = arith.extui %62 : vector<8x128xi1> to vector<8x128xi32>
    %64 = arith.sitofp %63 : vector<8x128xi32> to vector<8x128xf32>
    %65 = arith.truncf %64 : vector<8x128xf32> to vector<8x128xbf16>
    %c3 = arith.constant 3 : index
    %c0_19 = arith.constant 0 : index
    %c0_20 = arith.constant 0 : index
    %66 = vector.load %arg2[%c3, %c0_19, %c0_20] : memref<4x128x32xbf16, #tpu.memory_space<vmem>>, vector<1x128x32xbf16>
    %67 = vector.shape_cast %66 : vector<1x128x32xbf16> to vector<128x32xbf16>
    %cst_21 = arith.constant dense<0.000000e+00> : vector<8x32xf32>
    %68 = tpu.matmul %65, %67, %cst_21 {dimension_numbers = #tpu.dot_dimension_numbers<[1], [0], [0], [1], [0, 0, 1, 1], [], []>} : vector<8x128xbf16>, vector<128x32xbf16>, vector<8x32xf32> -> vector<8x32xf32>
    %69 = arith.addf %59, %68 : vector<8x32xf32>
    %c128_i32_22 = arith.constant 128 : i32
    %70 = vector.broadcast %c128_i32_22 : i32 to vector<8x1xi32>
    %71 = arith.cmpi eq, %60, %70 : vector<8x1xi32>
    %72 = arith.extui %71 : vector<8x1xi1> to vector<8x1xi32>
    %73 = arith.sitofp %72 : vector<8x1xi32> to vector<8x1xf32>
    %c3_23 = arith.constant 3 : index
    %c0_24 = arith.constant 0 : index
    %74 = vector.load %arg3[%c3_23, %c0_24] : memref<4x32xf32, #tpu.memory_space<vmem>>, vector<1x32xf32>
    %75 = vector.broadcast %73 : vector<8x1xf32> to vector<8x32xf32>
    %76 = vector.broadcast %74 : vector<1x32xf32> to vector<8x32xf32>
    %77 = arith.mulf %75, %76 : vector<8x32xf32>
    %78 = arith.addf %69, %77 : vector<8x32xf32>
    %79 = arith.truncf %78 : vector<8x32xf32> to vector<8x32xbf16>
    %c0_25 = arith.constant 0 : index
    %c0_26 = arith.constant 0 : index
    %80 = vector.load %arg4[%c0_25, %c0_26] : memref<32x64xbf16, #tpu.memory_space<vmem>>, vector<32x64xbf16>
    %cst_27 = arith.constant dense<0.000000e+00> : vector<8x64xf32>
    %81 = tpu.matmul %79, %80, %cst_27 {dimension_numbers = #tpu.dot_dimension_numbers<[1], [0], [0], [1], [0, 0, 1, 1], [], []>} : vector<8x32xbf16>, vector<32x64xbf16>, vector<8x64xf32> -> vector<8x64xf32>
    %c0_28 = arith.constant 0 : index
    %c0_29 = arith.constant 0 : index
    %82 = vector.load %arg5[%c0_28, %c0_29] : memref<1x64xf32, #tpu.memory_space<vmem>>, vector<1x64xf32>
    %83 = vector.broadcast %82 : vector<1x64xf32> to vector<8x64xf32>
    %84 = arith.addf %81, %83 : vector<8x64xf32>
    %cst_30 = arith.constant 5.000000e-01 : f32
    %85 = vector.broadcast %cst_30 : f32 to vector<8x64xf32>
    %86 = arith.mulf %85, %84 : vector<8x64xf32>
    %cst_31 = arith.constant 4.471500e-02 : f32
    %87 = vector.broadcast %cst_31 : f32 to vector<8x64xf32>
    %88 = arith.mulf %87, %84 : vector<8x64xf32>
    %89 = arith.mulf %88, %84 : vector<8x64xf32>
    %90 = arith.mulf %89, %84 : vector<8x64xf32>
    %91 = arith.addf %84, %90 : vector<8x64xf32>
    %cst_32 = arith.constant 0.797884583 : f32
    %92 = vector.broadcast %cst_32 : f32 to vector<8x64xf32>
    %93 = arith.mulf %92, %91 : vector<8x64xf32>
    %94 = math.tanh %93 : vector<8x64xf32>
    %cst_33 = arith.constant 1.000000e+00 : f32
    %95 = vector.broadcast %cst_33 : f32 to vector<8x64xf32>
    %96 = arith.addf %95, %94 : vector<8x64xf32>
    %97 = arith.mulf %86, %96 : vector<8x64xf32>
    %98 = arith.truncf %97 : vector<8x64xf32> to vector<8x64xbf16>
    %c0_34 = arith.constant 0 : index
    %c0_35 = arith.constant 0 : index
    %99 = vector.load %arg6[%c0_34, %c0_35] : memref<64x512xbf16, #tpu.memory_space<vmem>>, vector<64x512xbf16>
    %cst_36 = arith.constant dense<0.000000e+00> : vector<8x512xf32>
    %100 = tpu.matmul %98, %99, %cst_36 {dimension_numbers = #tpu.dot_dimension_numbers<[1], [0], [0], [1], [0, 0, 1, 1], [], []>} : vector<8x64xbf16>, vector<64x512xbf16>, vector<8x512xf32> -> vector<8x512xf32>
    %c0_37 = arith.constant 0 : index
    %c0_38 = arith.constant 0 : index
    %101 = vector.load %arg7[%c0_37, %c0_38] : memref<1x512xf32, #tpu.memory_space<vmem>>, vector<1x512xf32>
    %102 = vector.broadcast %101 : vector<1x512xf32> to vector<8x512xf32>
    %103 = arith.addf %100, %102 : vector<8x512xf32>
    %104 = vector.extract_strided_slice %103 {offsets = [0, 0], sizes = [8, 128], strides = [1, 1]} : vector<8x512xf32> to vector<8x128xf32>
    %c0_39 = arith.constant 0 : index
    %c0_40 = arith.constant 0 : index
    %c0_41 = arith.constant 0 : index
    %c0_42 = arith.constant 0 : index
    %105 = vector.load %arg8[%c0_39, %c0_40, %c0_41, %c0_42] : memref<1x4x8x128xf32, #tpu.memory_space<vmem>>, vector<1x1x8x128xf32>
    %106 = vector.shape_cast %105 : vector<1x1x8x128xf32> to vector<8x128xf32>
    %107 = vector.shape_cast %104 : vector<8x128xf32> to vector<1x1x8x128xf32>
    tpu.vector_store %arg8[%c0_39, %c0_40, %c0_41, %c0_42], %107 {strides = array<i32>} : memref<1x4x8x128xf32, #tpu.memory_space<vmem>>, vector<1x1x8x128xf32>,
    %108 = vector.extract_strided_slice %103 {offsets = [0, 128], sizes = [8, 128], strides = [1, 1]} : vector<8x512xf32> to vector<8x128xf32>
    %c0_43 = arith.constant 0 : index
    %c1_44 = arith.constant 1 : index
    %c0_45 = arith.constant 0 : index
    %c0_46 = arith.constant 0 : index
    %109 = vector.load %arg8[%c0_43, %c1_44, %c0_45, %c0_46] : memref<1x4x8x128xf32, #tpu.memory_space<vmem>>, vector<1x1x8x128xf32>
    %110 = vector.shape_cast %109 : vector<1x1x8x128xf32> to vector<8x128xf32>
    %111 = vector.shape_cast %108 : vector<8x128xf32> to vector<1x1x8x128xf32>
    tpu.vector_store %arg8[%c0_43, %c1_44, %c0_45, %c0_46], %111 {strides = array<i32>} : memref<1x4x8x128xf32, #tpu.memory_space<vmem>>, vector<1x1x8x128xf32>,
    %112 = vector.extract_strided_slice %103 {offsets = [0, 256], sizes = [8, 128], strides = [1, 1]} : vector<8x512xf32> to vector<8x128xf32>
    %c0_47 = arith.constant 0 : index
    %c2_48 = arith.constant 2 : index
    %c0_49 = arith.constant 0 : index
    %c0_50 = arith.constant 0 : index
    %113 = vector.load %arg8[%c0_47, %c2_48, %c0_49, %c0_50] : memref<1x4x8x128xf32, #tpu.memory_space<vmem>>, vector<1x1x8x128xf32>
    %114 = vector.shape_cast %113 : vector<1x1x8x128xf32> to vector<8x128xf32>
    %115 = vector.shape_cast %112 : vector<8x128xf32> to vector<1x1x8x128xf32>
    tpu.vector_store %arg8[%c0_47, %c2_48, %c0_49, %c0_50], %115 {strides = array<i32>} : memref<1x4x8x128xf32, #tpu.memory_space<vmem>>, vector<1x1x8x128xf32>,
    %116 = vector.extract_strided_slice %103 {offsets = [0, 384], sizes = [8, 128], strides = [1, 1]} : vector<8x512xf32> to vector<8x128xf32>
    %c0_51 = arith.constant 0 : index
    %c3_52 = arith.constant 3 : index
    %c0_53 = arith.constant 0 : index
    %c0_54 = arith.constant 0 : index
    %117 = vector.load %arg8[%c0_51, %c3_52, %c0_53, %c0_54] : memref<1x4x8x128xf32, #tpu.memory_space<vmem>>, vector<1x1x8x128xf32>
    %118 = vector.shape_cast %117 : vector<1x1x8x128xf32> to vector<8x128xf32>
    %119 = vector.shape_cast %116 : vector<8x128xf32> to vector<1x1x8x128xf32>
    tpu.vector_store %arg8[%c0_51, %c3_52, %c0_53, %c0_54], %119 {strides = array<i32>} : memref<1x4x8x128xf32, #tpu.memory_space<vmem>>, vector<1x1x8x128xf32>,
    return
  }
  func.func @transform_0(%arg0: i32) -> (i32, i32) {
    %c0_i32 = arith.constant 0 : i32
    %c0_i32_0 = arith.constant 0 : i32
    return %arg0, %c0_i32 : i32, i32
  }
  func.func @transform_1(%arg0: i32) -> (i32, i32, i32) {
    %c0_i32 = arith.constant 0 : i32
    %c0_i32_0 = arith.constant 0 : i32
    %c0_i32_1 = arith.constant 0 : i32
    %c0_i32_2 = arith.constant 0 : i32
    return %c0_i32, %c0_i32_0, %c0_i32_1 : i32, i32, i32
  }
  func.func @transform_2(%arg0: i32) -> (i32, i32) {
    %c0_i32 = arith.constant 0 : i32
    %c0_i32_0 = arith.constant 0 : i32
    %c0_i32_1 = arith.constant 0 : i32
    return %c0_i32, %c0_i32_0 : i32, i32
  }
  func.func @transform_3(%arg0: i32) -> (i32, i32) {
    %c0_i32 = arith.constant 0 : i32
    %c0_i32_0 = arith.constant 0 : i32
    %c0_i32_1 = arith.constant 0 : i32
    return %c0_i32, %c0_i32_0 : i32, i32
  }
  func.func @transform_4(%arg0: i32) -> (i32, i32) {
    %c0_i32 = arith.constant 0 : i32
    %c0_i32_0 = arith.constant 0 : i32
    %c0_i32_1 = arith.constant 0 : i32
    return %c0_i32, %c0_i32_0 : i32, i32
  }
  func.func @transform_5(%arg0: i32) -> (i32, i32) {
    %c0_i32 = arith.constant 0 : i32
    %c0_i32_0 = arith.constant 0 : i32
    %c0_i32_1 = arith.constant 0 : i32
    return %c0_i32, %c0_i32_0 : i32, i32
  }
  func.func @transform_6(%arg0: i32) -> (i32, i32) {
    %c0_i32 = arith.constant 0 : i32
    %c0_i32_0 = arith.constant 0 : i32
    %c0_i32_1 = arith.constant 0 : i32
    return %c0_i32, %c0_i32_0 : i32, i32
  }
  func.func @transform_7(%arg0: i32) -> (i32, i32, i32, i32) {
    %c0_i32 = arith.constant 0 : i32
    %c0_i32_0 = arith.constant 0 : i32
    %c0_i32_1 = arith.constant 0 : i32
    %c0_i32_2 = arith.constant 0 : i32
    return %arg0, %c0_i32, %c0_i32_0, %c0_i32_1 : i32, i32, i32, i32
  }
}

</mosaic_0001>

<bundles_post_ra>
// kernel: audio_lm_forward.1
= control target key start
LH: loop header
LB: loop body
LE: loop exit
PB: predicated region body
PF: predicated region fallthrough
CT: control target
= control target key end

     0   :  { %12 = vsyncpa [#allocation3], 0  ;;  %s1766_s0 = inlined_call_operand.vmem [shape: s32[16,4], index: 0, kind: input, shape index: {}]   ;;  %s1767_s1 = inlined_call_operand.vmem [shape: bf16[4,128,32], index: 1, kind: input, shape index: {}]   ;;  %s1768_s2 = inlined_call_operand.vmem [shape: f32[4,32], index: 2, kind: input, shape index: {}]   ;;  %s1769_s3 = inlined_call_operand.vmem [shape: bf16[32,64], index: 3, kind: input, shape index: {}]   ;;  %s1770_s4 = inlined_call_operand.vmem [shape: f32[1,64], index: 4, kind: input, shape index: {}]   ;;  %s1771_s5 = inlined_call_operand.vmem [shape: bf16[64,512], index: 5, kind: input, shape index: {}]   ;;  %s1772_s6 = inlined_call_operand.vmem [shape: f32[1,512], index: 6, kind: input, shape index: {}]   ;;  %s1773_s7 = inlined_call_operand.hbm [shape: f32[2,4,8,128], index: 7, kind: output, shape index: {}]  }
   0x1   :  { %14 = vsyncpa [#allocation3 + $0x1], 0  ;;  %s1456_s24 = smov 0   ;;  %s1458_s25 = smov 0  }
   0x2   :  { %s1460_s26 = smov 0   ;;  %s1462_s27 = smov 0  }
   0x3 LB: > { %s1477_s28 = sadd.s32 4294967295, %s1406_s27   ;;  %s950_s29 = sadd.s32 4294967294, %s1406_s27   ;;  %s1406_s27 = sphi %s1462_s27, %s1779_s27   ;;  %s1402_s26 = sphi %s1460_s26, %s1778_s26   ;;  %s1398_s25 = sphi %s1458_s25, %s1777_s25   ;;  %s1394_s24 = sphi %s1456_s24, %s1776_s24  }
   0x4   : > { %s1481_s30 = sadd.s32 1, %s1406_s27   ;;  %s179_s8 = sadd.s32 1, %s1402_s26 }
   0x5   : > { %s176_s9 = ssub.s32 %s1406_s27, %s1481_s30  ;;  %p189_p0 = scmp.ne.s32.totalorder %s1402_s26, %s1398_s25 }
   0x6   : > { %p177_p1 = scmp.eq.s32.totalorder %s176_s9, 0  ;;  %p190_p2 = scmp.eq.s32.totalorder %s1477_s28, 1 }
   0x7   : > { %p195_p3 = scmp.ne.s32.totalorder %s1398_s25, %s1394_s24  ;;  %p196_p4 = scmp.eq.s32.totalorder %s950_s29, 1 }
   0x8   : > { %s1492_s10 = scalar_select %p177_p1, %s1402_s26, %s179_s8  }
   0x9   : > { %p1494_p5 = por %p190_p2, %p189_p0  ;;  %p1498_p6 = por %p196_p4, %p195_p3 }
   0xa   : > { %p953_p7 = scmp.ge.s32.totalorder %s1406_s27, 1  ;;  %p239_p8 = scmp.lt.s32.totalorder %s1406_s27, 3 }
   0xc   : > { %p240_p9 = pnand %p953_p7, %p239_p8 }
   0xd   : > { %p270_p10 = scmp.lt.s32.totalorder (!%p240_p9), %s1477_s28, 1  ;;  %s1364_s22 = scalar_lea.hbm (!%p240_p9), %s1773_s7, 64 }
   0xe   : > { %243 = sbr.rel (%p240_p9) target bundleno = 585 (0x249), region = 48 }
  0x13   : > { %v1237_v0 = vld [vmem:[%s1767_s1 + $0x38] sm:$0xff]  ;;  %v1408_v1 = vmov 1   ;;  %v1409_v2 = vmov 0   ;;  %s271_s17 = scalar_select %p270_p10, %s1477_s28, 1  ;;  %v1236_v4 = vld [vmem:[%s1767_s1 + $0x30] sm:$0xff]  ;;  %v1235_v11 = vld [vmem:[%s1767_s1 + $0x28] sm:$0xff]  ;;  %v276_v39 = vlaneseq }
  0x14   : > { %1330 = vset.pattern.permute.xlu1 %v1408_v1  ;;  %1328 = vset.pattern.permute.xlu0 %v1409_v2  ;;  %v1245_v3 = vld [vmem:[%s1767_s1 + $0x78] sm:$0xff]  ;;  %v1244_v7 = vld [vmem:[%s1767_s1 + $0x70] sm:$0xff]  ;;  %v1243_v12 = vld [vmem:[%s1767_s1 + $0x68] sm:$0xff]  ;;  %v1410_v20 = vmov 3   ;;  %v1411_v21 = vmov 2   ;;  %v1412_v37 = vmov 0.0  }
  0x15   : > { %360 = vmatpush.bf16.msra.mxu0 %v1237_v0  ;;  %v1253_v5 = vld [vmem:[%s1767_s1 + $0xb8] sm:$0xff]  ;;  %1332 = vset.pattern.permute.xlu2 %v1409_v2  ;;  %s955_s29 = sshll.u32 %s271_s17, 3  ;;  %v1252_v8 = vld [vmem:[%s1767_s1 + $0xb0] sm:$0xff]  ;;  %v1251_v13 = vld [vmem:[%s1767_s1 + $0xa8] sm:$0xff]  ;;  %v277_v40 = vand.u32 127, %v276_v39  ;;  %vm676_vm9 = vcmask 261120  }
  0x16   : > { %445 = vmatpush.bf16.msra.mxu1 %v1245_v3  ;;  %v1261_v6 = vld [vmem:[%s1767_s1 + $0xf8] sm:$0xff]  ;;  %539 = vmatpush.bf16.msra.mxu2 %v1253_v5  ;;  %s273_s18 = scalar_lea.vmem %s1766_s0, %s955_s29  ;;  %v1260_v9 = vld [vmem:[%s1767_s1 + $0xf0] sm:$0xff]  ;;  %v1234_v14 = vld [vmem:[%s1767_s1 + $0x20] sm:$0xff]  ;;  %v1413_v43 = vmov 1.0|1.0   ;;  %vm809_vm10 = vcmask 523264  }
  0x17   : > { %633 = vmatpush.bf16.msra.mxu3 %v1261_v6  ;;  %v1534_v10 = vld [vmem:[%s273_s18] sm:$0xff]  ;;  %v1259_v15 = vld [vmem:[%s1767_s1 + $0xe8] sm:$0xff]  ;;  %v1233_v18 = vld [vmem:[%s1767_s1 + $0x18] sm:$0xff]  ;;  %s267_s17 = sand.u32 1, %s1398_s25   ;;  %s1280_s29 = sshll.u32 %s1477_s28, 5 }
  0x18   : > { %374 = vperm.xlu1 %1330, %v1534_v10   ;;  %279 = vperm.xlu0 %1328, %v1534_v10   ;;  %v1242_v16 = vld [vmem:[%s1767_s1 + $0x60] sm:$0xff]  ;;  %v1241_v22 = vld [vmem:[%s1767_s1 + $0x58] sm:$0xff]  ;;  %v1232_v24 = vld [vmem:[%s1767_s1 + $0x10] sm:$0xff]  ;;  %vm301_vm0 = vcmp.eq.s32.totalorder %v1534_v10, 128  ;;  %s954_s23 = sshll.u32 %s267_s17, 5  ;;  %s884_s13 = scalar_lea.hbm %s1773_s7, %s1280_s29 }
  0x19   : > { %361 = vmatpush.bf16.msra.mxu0 %v1236_v4  ;;  %v1250_v17 = vld [vmem:[%s1767_s1 + $0xa0] sm:$0xff]  ;;  %v1249_v23 = vld [vmem:[%s1767_s1 + $0x98] sm:$0xff]  ;;  %v1240_v26 = vld [vmem:[%s1767_s1 + $0x50] sm:$0xff]  ;;  %v957_v38 = vsel %vm301_vm0, 1.0, %v1412_v37  ;;  %s269_s14 = scalar_lea.vmem [#allocation2], %s954_s23  ;;  %s887_s16 = sshll.u32 %s884_s13, 4  ;;  %s888_s16 = int_to_ptr.hbm [resolvable:$true] %s887_s16 }
  0x1a   : > { %446 = vmatpush.bf16.msra.mxu1 %v1244_v7  ;;  %540 = vmatpush.bf16.msra.mxu2 %v1252_v8  ;;  %v1258_v19 = vld [vmem:[%s1767_s1 + $0xe0] sm:$0xff]  ;;  %v1257_v25 = vld [vmem:[%s1767_s1 + $0xd8] sm:$0xff]  ;;  %v1231_v27 = vld [vmem:[%s1767_s1 + $0x8] sm:$0xff]  ;;  %s885_s15 = sshll.u32 %s269_s14, 4  ;;  %s873_s28 = scalar_lea.sflag [#allocation3], %s267_s17  ;;  %s886_s15 = int_to_ptr.vmem [resolvable:$true] %s885_s15 }
  0x1b   : > { %634 = vmatpush.bf16.msra.mxu3 %v1260_v9  ;;  %v1239_v28 = vld [vmem:[%s1767_s1 + $0x48] sm:$0xff]  ;;  %v1230_v29 = vld [vmem:[%s1767_s1] sm:$0xff]  ;;  %v1248_v31 = vld [vmem:[%s1767_s1 + $0x90] sm:$0xff]  ;;  %307 = vperm.xlu2 %1332, %v957_v38   ;;  %s1358_s18 = sshra.s32 %s888_s16, 4  ;;  %s1359_s18 = int_to_ptr.hbm [resolvable:$true] %s1358_s18 }
  0x1c   : > { %v1238_v30 = vld [vmem:[%s1767_s1 + $0x40] sm:$0xff]  ;;  %v1256_v32 = vld [vmem:[%s1767_s1 + $0xd0] sm:$0xff]  ;;  %v1247_v33 = vld [vmem:[%s1767_s1 + $0x88] sm:$0xff]  ;;  %s1360_s19 = scalar_lea.hbm %s1359_s18, 32  ;;  %p1365_p0 = scmp.lt.s32.totalorder %s1359_s18, %s1773_s7 }
  0x1d   : > { %362 = vmatpush.bf16.msra.mxu0 %v1235_v11  ;;  %v1255_v34 = vld [vmem:[%s1767_s1 + $0xc8] sm:$0xff]  ;;  %v1246_v35 = vld [vmem:[%s1767_s1 + $0x80] sm:$0xff]  ;;  %v1271_v39 = vld [vmem:[%s1771_s5 + $0x34] sm:$0xf0]  ;;  %p1361_p11 = scmp.ne.s32.totalorder %s1359_s18, %s1360_s19  ;;  %p1366_p1 = scmp.lt.s32.totalorder %s1364_s22, %s1360_s19 }
  0x1e   : > { %447 = vmatpush.bf16.msra.mxu1 %v1243_v12  ;;  %541 = vmatpush.bf16.msra.mxu2 %v1251_v13  ;;  %v1254_v36 = vld [vmem:[%s1767_s1 + $0xc0] sm:$0xff]  ;;  %v1263_v46 = vld [vmem:[%s1769_s3 + $0x8] sm:$0xff]  ;;  %v1206_v13 = vld [vmem:[%s1771_s5 + $0x70] sm:$0xf0] }
  0x1f   : > { %635 = vmatpush.bf16.msra.mxu3 %v1259_v15  ;;  %v1262_v47 = vld [vmem:[%s1769_s3] sm:$0xff]  ;;  %p1362_p12 = pnand %p1361_p11, %p1494_p5  ;;  %p1367_p2 = por %p1366_p1, %p1365_p0 }
  0x20   : > { %1331 = vset.pattern.permute.xlu1 %v1410_v20  ;;  %1329 = vset.pattern.permute.xlu0 %v1411_v21  ;;  %v1337_v49 = vld [vmem:[%s1768_s2] ss:$0 sm:$0xff]  ;;  %v1338_v54 = vld [vmem:[%s1768_s2 + $0x1] ss:$0 sm:$0xff]  ;;  %v1339_v60 = vld [vmem:[%s1768_s2 + $0x2] ss:$0 sm:$0xff] }
  0x21   : > { %363 = vmatpush.bf16.msra.mxu0 %v1234_v14  ;;  %562 = vperm.xlu1 %1331, %v1534_v10   ;;  %v1276_v12 = vld [vmem:[%s1771_s5 + $0x64] sm:$0xf]  ;;  %v1212_v14 = vld [vmem:[%s1771_s5 + $0x68] sm:$0xf]  ;;  %p1363_p13 = pneg %p1362_p12 }
  0x22   : > { %468 = vperm.xlu0 %1329, %v1534_v10   ;;  %448 = vmatpush.bf16.msra.mxu1 %v1242_v16  ;;  %v1209_v15 = vor.u32 %v1276_v12, %v1206_v13  ;;  %v1279_v16 = vld [vmem:[%s1771_s5 + $0x74] sm:$0xf0] }
  0x23   : > { %542 = vmatpush.bf16.msra.mxu2 %v1250_v17  ;;  %636 = vmatpush.bf16.msra.mxu3 %v1258_v19  ;;  %v1204_v17 = vld [vmem:[%s1771_s5 + $0x60] sm:$0xf]  ;;  %v1213_v19 = vor.u32 %v1279_v16, %v1212_v14  ;;  %p1368_p3 = pnand %p1367_p2, %p1363_p13 }
  0x24   : > { %1333 = vset.pattern.permute.xlu2 %v1408_v1  ;;  %v1340_v1 = vld [vmem:[%s1768_s2 + $0x3] ss:$0 sm:$0xff] }
  0x25   : > { %364 = vmatpush.bf16.msra.mxu0 %v1233_v18  ;;  %461 = vperm.xlu2 %1333, %v957_v38   ;;  %v1278_v18 = vld [vmem:[%s1771_s5 + $0x6c] sm:$0xf0] }
  0x26   : > { %449 = vmatpush.bf16.msra.mxu1 %v1241_v22  ;;  %v1214_v22 = vld [vmem:[%s1771_s5 + $0x78] sm:$0xf0] }
  0x27   : > { %543 = vmatpush.bf16.msra.mxu2 %v1249_v23  ;;  %637 = vmatpush.bf16.msra.mxu3 %v1257_v25  ;;  %v1272_v23 = vld [vmem:[%s1771_s5 + $0x44] sm:$0xf]  ;;  %v1190_v25 = vld [vmem:[%s1771_s5 + $0x50] sm:$0xf0] }
  0x29   : > { %365 = vmatpush.bf16.msra.mxu0 %v1232_v24  ;;  %1334 = vset.pattern.permute.xlu1 %v1411_v21  ;;  %v1277_v21 = vld [vmem:[%s1771_s5 + $0x6c] sm:$0xf] }
  0x2a   : > { %1336 = vset.pattern.permute.xlu0 %v1410_v20  ;;  %450 = vmatpush.bf16.msra.mxu1 %v1240_v26  ;;  %v1217_v24 = vor.u32 %v1277_v21, %v1214_v22  ;;  %v1196_v26 = vld [vmem:[%s1771_s5 + $0x48] sm:$0xf] }
  0x2b   : > { %544 = vmatpush.bf16.msra.mxu2 %v1248_v31  ;;  %638 = vmatpush.bf16.msra.mxu3 %v1256_v32  ;;  %v1274_v31 = vld [vmem:[%s1771_s5 + $0x4c] sm:$0xf0]  ;;  %v1273_v32 = vld [vmem:[%s1771_s5 + $0x4c] sm:$0xf] }
  0x2c   : > { %555 = vperm.xlu1 %1334, %v957_v38  }
  0x2d   : > { %366 = vmatpush.bf16.msra.mxu0 %v1231_v27  ;;  %1335 = vset.pattern.permute.xlu2 %v1410_v20  ;;  %v1205_v20 = vor.u32 %v1278_v18, %v1204_v17  ;;  %v1275_v27 = vld [vmem:[%s1771_s5 + $0x54] sm:$0xf0] }
  0x2e   : > { %451 = vmatpush.bf16.msra.mxu1 %v1239_v28  ;;  %649 = vperm.xlu2 %1335, %v957_v38   ;;  %v1193_v28 = vor.u32 %v1272_v23, %v1190_v25  ;;  %v1180_v38 = vld [vmem:[%s1771_s5 + $0x28] sm:$0xf] }
  0x2f   : > { %545 = vmatpush.bf16.msra.mxu2 %v1247_v33  ;;  %639 = vmatpush.bf16.msra.mxu3 %v1255_v34  ;;  %v1198_v34 = vld [vmem:[%s1771_s5 + $0x58] sm:$0xf0] }
  0x30   : > { %v1201_v37 = vor.u32 %v1273_v32, %v1198_v34 }
  0x31   : > { %367 = vmatpush.bf16.msra.mxu0 %v1230_v29  ;;  %v1197_v29 = vor.u32 %v1275_v27, %v1196_v26 }
  0x32   : > { %452 = vmatpush.bf16.msra.mxu1 %v1238_v30  ;;  %v1188_v30 = vld [vmem:[%s1771_s5 + $0x40] sm:$0xf] }
  0x33   : > { %546 = vmatpush.bf16.msra.mxu2 %v1246_v35  ;;  %640 = vmatpush.bf16.msra.mxu3 %v1254_v36  ;;  %v1189_v33 = vor.u32 %v1274_v31, %v1188_v30  ;;  %v1268_v35 = vld [vmem:[%s1771_s5 + $0x24] sm:$0xf]  ;;  %v1174_v36 = vld [vmem:[%s1771_s5 + $0x30] sm:$0xf0] }
  0x35   : > { %686 = vmatpush.bf16.msrb.mxu0 %v1263_v46 }
  0x36   : > { %817 = vmatpush.bf16.msrb.mxu1 %v1205_v20 }
  0x37   : > { %830 = vmatpush.bf16.msrb.mxu2 %v1209_v15  ;;  %843 = vmatpush.bf16.msrb.mxu3 %v1213_v19 }
  0x39   : > { %687 = vmatpush.bf16.msrb.mxu0 %v1262_v47  ;;  %v1264_v47 = vld [vmem:[%s1771_s5 + $0x4] sm:$0xf] }
  0x3a   : > { %818 = vmatpush.bf16.msrb.mxu1 %v1189_v33 }
  0x3b   : > { %831 = vmatpush.bf16.msrb.mxu2 %v1193_v28  ;;  %844 = vmatpush.bf16.msrb.mxu3 %v1197_v29 }
  0x75   : > { %v308_v48 = vpop.permute.xlu2 %307 }
  0x76   : > { %v311_v52 = vmul.f32 %v1337_v49, %v308_v48  ;;  %v1158_v48 = vld [vmem:[%s1771_s5 + $0x10] sm:$0xf0]  ;;  %v1164_v49 = vld [vmem:[%s1771_s5 + $0x8] sm:$0xf] }
  0x7f   : > { %v462_v55 = vpop.permute.xlu2 %461 }
  0x80   : > { %v465_v59 = vmul.f32 %v1338_v54, %v462_v55  ;;  %v1265_v54 = vld [vmem:[%s1771_s5 + $0xc] sm:$0xf]  ;;  %v1166_v55 = vld [vmem:[%s1771_s5 + $0x18] sm:$0xf0] }
  0x88   : > { %v650_v3 = vpop.permute.xlu2 %649 }
  0x89   : > { %v653_v6 = vmul.f32 %v1340_v1, %v650_v3 }
  0x8a   : > { %v375_v41 = vpop.permute.xlu1 %374  ;;  %v280_v42 = vpop.permute.xlu0 %279 }
  0x8b   : > { %vm376_vm1 = vcmp.eq.s32.totalorder %v277_v40, %v375_v41  ;;  %vm281_vm2 = vcmp.eq.s32.totalorder %v277_v40, %v280_v42  ;;  %v1177_v41 = vor.u32 %v1268_v35, %v1174_v36  ;;  %v1270_v42 = vld [vmem:[%s1771_s5 + $0x2c] sm:$0xf0] }
  0x8c   : > { %vm1041_vm3 = vmpackc.low %vm376_vm1, %vm376_vm1 }
  0x8d   : > { %vm990_vm4 = vmpackc.low %vm281_vm2, %vm281_vm2  ;;  %1042 = vmatmul.msk.bf16.vlgmr.msra.gmra.mxu1 %vm1041_vm3, %v1413_v43  ;;  %832 = vmatpush.bf16.msrb.mxu2 %v1177_v41 }
  0x8e   : > { %991 = vmatmul.msk.bf16.vlgmr.msra.gmra.mxu0 %vm990_vm4, %v1413_v43 }
  0x8f   : > { %856 = vmatpush.bf16.msra.mxu0 %v1217_v24 }
  0x93   : > { %v563_v44 = vpop.permute.xlu1 %562  ;;  %857 = vmatpush.bf16.msra.mxu0 %v1201_v37 }
  0x94   : > { %v469_v45 = vpop.permute.xlu0 %468  ;;  %vm564_vm5 = vcmp.eq.s32.totalorder %v277_v40, %v563_v44  ;;  %v1182_v44 = vld [vmem:[%s1771_s5 + $0x38] sm:$0xf0] }
  0x95   : > { %vm470_vm6 = vcmp.eq.s32.totalorder %v277_v40, %v469_v45  ;;  %vm1143_vm7 = vmpackc.low %vm564_vm5, %vm564_vm5  ;;  %v1172_v40 = vld [vmem:[%s1771_s5 + $0x20] sm:$0xf]  ;;  %v1181_v45 = vor.u32 %v1271_v39, %v1180_v38 }
  0x96   : > { %vm1092_vm8 = vmpackc.low %vm470_vm6, %vm470_vm6  ;;  %1144 = vmatmul.msk.bf16.vlgmr.msra.gmra.mxu3 %vm1143_vm7, %v1413_v43  ;;  %v1173_v46 = vor.u32 %v1270_v42, %v1172_v40 }
  0x97   : > { %1093 = vmatmul.msk.bf16.vlgmr.msra.gmra.mxu2 %vm1092_vm8, %v1413_v43  ;;  %v1269_v43 = vld [vmem:[%s1771_s5 + $0x2c] sm:$0xf]  ;;  %845 = vmatpush.bf16.msrb.mxu3 %v1181_v45 }
  0x98   : > { %819 = vmatpush.bf16.msrb.mxu1 %v1173_v46 }
  0x9e   : > { %v556_v61 = vpop.permute.xlu1 %555 }
  0x9f   : > { %v559_v0 = vmul.f32 %v1339_v60, %v556_v61  ;;  %v1341_v60 = vld [vmem:[%s1770_s4] ss:$0 sm:$0xff] }
 0x10a   : > { %v454_v50 = vpop.f32.mrf.mxu1 }
 0x10b   : > { %v369_v51 = vpop.f32.mrf.mxu0 }
 0x10c   : > { %v370_v53 = vadd.f32 %v369_v51, %v311_v52  ;;  %v1267_v51 = vld [vmem:[%s1771_s5 + $0x14] sm:$0xf0]  ;;  %v1156_v52 = vld [vmem:[%s1771_s5] sm:$0xf] }
 0x10e   : > { %v458_v58 = vadd.f32 %v454_v50, %v370_v53  ;;  %v1185_v50 = vor.u32 %v1269_v43, %v1182_v44  ;;  %v1266_v53 = vld [vmem:[%s1771_s5 + $0xc] sm:$0xf0] }
 0x110   : > { %v466_v62 = vadd.f32 %v465_v59, %v458_v58  ;;  %v1157_v58 = vor.u32 %v1266_v53, %v1156_v52  ;;  %858 = vmatpush.bf16.msra.mxu0 %v1185_v50  ;;  %v1169_v59 = vor.u32 %v1265_v54, %v1166_v55 }
 0x112   : > { %v456_v56 = vpop.f32.mrf.mxu1  ;;  %820 = vmatpush.bf16.msrb.mxu1 %v1157_v58 }
 0x113   : > { %v371_v57 = vpop.f32.mrf.mxu0  ;;  %v1161_v56 = vor.u32 %v1264_v47, %v1158_v48 }
 0x114   : > { %v1165_v57 = vor.u32 %v1267_v51, %v1164_v49  ;;  %859 = vmatpush.bf16.msra.mxu0 %v1169_v59 }
 0x115   : > { %833 = vmatpush.bf16.msrb.mxu2 %v1161_v56 }
 0x116   : > { %846 = vmatpush.bf16.msrb.mxu3 %v1165_v57 }
 0x119   : > { %v642_v63 = vpop.f32.mrf.mxu3 }
 0x11a   : > { %v548_v2 = vpop.f32.mrf.mxu2 }
 0x11b   : > { %v552_v4 = vadd.f32 %v548_v2, %v466_v62 }
 0x11d   : > { %v560_v5 = vadd.f32 %v559_v0, %v552_v4 }
 0x11f   : > { %v646_v7 = vadd.f32 %v642_v63, %v560_v5 }
 0x121   : > { %v654_v8 = vadd.f32 %v653_v6, %v646_v7  ;;  %v644_v9 = vpop.f32.mrf.mxu3 }
 0x122   : > { %v550_v10 = vpop.f32.mrf.mxu2 }
 0x123   : > { %v655_v11 = vpack.c.bf16 %v654_v8, %v654_v8  ;;  %v719_v10 = vld [vmem:[%s1772_s6] sm:$0xf] }
 0x124   : > { %v724_v12 = vperm.slane %v719_v10, 3  ;;  %v722_v17 = vperm.slane %v719_v10, 1  ;;  %v723_v18 = vperm.slane %v719_v10, 2 }
 0x125   : > { %1153 = vmatmul.msk.bf16.vlgmr.msrb.gmra.mxu0 %vm676_vm9, %v655_v11  ;;  %v721_v11 = vperm.slane %v719_v10, 0 }
 0x1a2   : > { %v689_v61 = vpop.f32.mrf.mxu0 }
 0x1a3   : > { %v690_v62 = vadd.f32 %v1341_v60, %v689_v61 }
 0x1a5   : > { %v694_v63 = vmul.f32 0.044715, %v690_v62  ;;  %v693_v6 = vmul.f32 0.5, %v690_v62 }
 0x1a7   : > { %v695_v0 = vmul.f32 %v694_v63, %v690_v62 }
 0x1a9   : > { %v696_v1 = vmul.f32 %v695_v0, %v690_v62 }
 0x1aa   : > { %v691_v2 = vpop.f32.mrf.mxu0 }
 0x1ab   : > { %v697_v3 = vadd.f32 %v696_v1, %v690_v62 }
 0x1ad   : > { %v698_v4 = vmul.f32 0.7978846, %v697_v3 }
 0x1af   : > { %1342 = vtanh.f32 %v698_v4 }
 0x1b5   : > { %v1343_v5 = vpop.eup %1342 }
 0x1b6   : > { %v700_v7 = vadd.f32 1.0, %v1343_v5 }
 0x1b8   : > { %v701_v8 = vmul.f32 %v700_v7, %v693_v6 }
 0x1ba   : > { %v702_v9 = vpack.c.bf16 %v701_v8, %v701_v8 }
 0x1bc   : > { %1218 = vmatmul.msk.bf16.vlgmr.msrb.gmra.mxu1 %vm809_vm10, %v702_v9  ;;  %1219 = vmatmul.msk.bf16.vlgmr.msrb.gmra.mxu2 %vm809_vm10, %v702_v9 }
 0x1bd   : > { %1220 = vmatmul.msk.bf16.vlgmr.msrb.gmra.mxu3 %vm809_vm10, %v702_v9  ;;  %1221 = vmatmul.msk.bf16.vlgmr.msra.gmra.mxu0 %vm809_vm10, %v702_v9 }
 0x239   : > { %v822_v13 = vpop.f32.mrf.mxu1 }
 0x23a   : > { %v823_v14 = vadd.f32 %v822_v13, %v721_v11  ;;  %v861_v15 = vpop.f32.mrf.mxu0 }
 0x23b   : > { %v862_v16 = vadd.f32 %v861_v15, %v724_v12 }
 0x23c   : > { %865 = vst [vmem:[%s269_s14] sm:$0xff] %v823_v14 }
 0x23d   : > { %1224 = vst [vmem:[%s269_s14 + $0x18] sm:$0xff] %v862_v16 }
 0x23f   : > { %v835_v19 = vpop.f32.mrf.mxu2 }
 0x240   : > { %v836_v20 = vadd.f32 %v835_v19, %v722_v17  ;;  %v848_v21 = vpop.f32.mrf.mxu3 }
 0x241   : > { %v849_v22 = vadd.f32 %v848_v21, %v723_v18  ;;  %v824_v23 = vpop.f32.mrf.mxu1 }
 0x242   : > { %1222 = vst [vmem:[%s269_s14 + $0x8] sm:$0xff] %v836_v20  ;;  %v863_v24 = vpop.f32.mrf.mxu0 }
 0x243   : > { %1223 = vst [vmem:[%s269_s14 + $0x10] sm:$0xff] %v849_v22 }
 0x244   : > { %1371 = shalt.err (!%p1368_p3)
}
 0x245   : > { %s1414_s17 = smov 128   ;;  %s1415_s8 = smov 8  }
 0x246   : > { %1281 = dma.vmem_to_hbm [thread:$0]  (%p1494_p5), %s886_s15, 512, %s888_s16, %s873_s28, %s1414_s17, %s1414_s17, %s1415_s8  }
 0x247   : > { %v837_v25 = vpop.f32.mrf.mxu2 }
 0x248   : > { %v850_v26 = vpop.f32.mrf.mxu3 }
 0x249 PF: > { %p1287_p4 = scmp.ge.s32.totalorder %s1406_s27, 2  ;;  %s902_s9 = sand.u32 1, %s1394_s24  }
 0x24a   : > { %s903_s13 = scalar_lea.sflag [#allocation3], %s902_s9 }
 0x24b   : > { %p1284_p7 = pnand %p1287_p4, %p1498_p6 }
 0x24d   : > { %p1285_p8 = pneg %p1284_p7 }
 0x24f   : > { %1389 = dma.done.wait (%p1285_p8), %s903_s13, 512  }
 0x250   : > { %1391 = vsyncadd (%p1285_p8), %s903_s13, 4294966784  ;;  %p17_p5 = scmp.ge.s32.totalorder %s1481_s30, 4   ;;  %s1776_s24 = smov %s1398_s25 }
 0x251   : > { %s1777_s25 = smov %s1402_s26  ;;  %s1778_s26 = smov %s1492_s10 }
 0x252   : > { %s1779_s27 = smov %s1481_s30  ;;  %19 = sbr.rel (!%p17_p5) target bundleno = 3 (0x3), region = 89 }
 0x257   :  { %909 = vsyncpa [#allocation3], 1 }
 0x258   :  { %911 = vsyncpa [#allocation3 + $0x1], 1 }

</bundles_post_ra>
